<compile_context>
chip_gen: v5e
topology: v5e:2x2
jax: 0.10.0
libtpu: 0.0.40
codegen_flags: <defaults>
</compile_context>

<pallas_src>
import jax
import jax.numpy as jnp
from jax.experimental import pallas as pl
from jax.experimental.pallas import tpu as pltpu


def _round_up(n: int, m: int) -> int:
    return ((n + m - 1) // m) * m


def _vmem_capacity_bytes() -> int:
    """Physical VMEM per core; conservative 64 MiB (v7x) if the query fails."""
    try:
        return int(pltpu.get_tpu_info().vmem_capacity_bytes)
    except Exception:
        return 64 * 1024 * 1024


def _generator_kernel(x_ref,
                      w1_ref, b1_ref,
                      w2_ref, b2_ref,
                      w3_ref, b3_ref,
                      wo_ref, bo_ref,
                      o_ref):
    """Fused forward for one batch tile:
    relu(relu(relu(x@W1+b1)@W2+b2)@W3+b3)@Wo+bo.

    Matmul operands are bf16 (MXU fast path), accumulation is f32, and all
    element-wise math (bias add, ReLU) stays in f32 (VPU-friendly on v5e).
    """
    h = jnp.dot(x_ref[...], w1_ref[...], preferred_element_type=jnp.float32)
    h = jnp.maximum(h + b1_ref[...], 0.0)

    h = jnp.dot(h.astype(jnp.bfloat16), w2_ref[...],
                preferred_element_type=jnp.float32)
    h = jnp.maximum(h + b2_ref[...], 0.0)

    h = jnp.dot(h.astype(jnp.bfloat16), w3_ref[...],
                preferred_element_type=jnp.float32)
    h = jnp.maximum(h + b3_ref[...], 0.0)

    y = jnp.dot(h.astype(jnp.bfloat16), wo_ref[...],
                preferred_element_type=jnp.float32)
    o_ref[...] = (y + bo_ref[...]).astype(o_ref.dtype)


def prepare_generator_params(params, *, lane: int = 128):
    """One-time preparation: zero-pad feature dims to `lane` multiples and cast
    to kernel dtypes (bf16 weights, f32 biases).

    Hoisted out of the hot path so each forward call does not re-pad / re-cast
    every parameter. Use lane=256 on v6e/v7x if the true hidden widths are
    >= 192 (matches the 2x256^2 MXU); keep lane=128 on v5e or for small dims.
    """
    G_in, W1 = params["w1"].shape
    W2 = params["w2"].shape[1]
    W3 = params["w3"].shape[1]
    G_out = params["wo"].shape[1]

    gin_p = _round_up(G_in, lane)
    w1_p = _round_up(W1, lane)
    w2_p = _round_up(W2, lane)
    w3_p = _round_up(W3, lane)
    gout_p = _round_up(G_out, lane)

    def pad2(a, rows, cols, dtype):
        return jnp.pad(a, ((0, rows - a.shape[0]),
                           (0, cols - a.shape[1]))).astype(dtype)

    # Zero-padding extra rows/cols is numerically exact: padded hidden units
    # are relu(0) = 0 and padded output lanes are sliced off in the wrapper.
    return {
        "w1p": pad2(params["w1"], gin_p, w1_p, jnp.bfloat16),
        "w2p": pad2(params["w2"], w1_p, w2_p, jnp.bfloat16),
        "w3p": pad2(params["w3"], w2_p, w3_p, jnp.bfloat16),
        "wop": pad2(params["wo"], w3_p, gout_p, jnp.bfloat16),
        "b1p": pad2(params["b1"], 1, w1_p, jnp.float32),
        "b2p": pad2(params["b2"], 1, w2_p, jnp.float32),
        "b3p": pad2(params["b3"], 1, w3_p, jnp.float32),
        "bop": pad2(params["bo"], 1, gout_p, jnp.float32),
        "dims": (G_in, G_out, W1, W2, W3),
        "padded_dims": (gin_p, w1_p, w2_p, w3_p, gout_p),
        "lane": lane,
    }


def _pick_tile_b(B, padded_dims, out_bytes, vmem_cap):
    """Largest batch tile that fits the VMEM budget, capped so the grid has at
    least two steps (megacore sharding on v7x) whenever the batch allows."""
    gin_p, w1_p, w2_p, w3_p, gout_p = padded_dims
    # Conservative: assume double-buffered weights (covers the fallback path).
    weight_bytes = 2 * 2 * (gin_p * w1_p + w1_p * w2_p + w2_p * w3_p + w3_p * gout_p)
    bias_bytes = 2 * 4 * (w1_p + w2_p + w3_p + gout_p)
    budget = int(0.6 * vmem_cap) - weight_bytes - bias_bytes
    # Per batch-row bytes: double-buffered bf16 x tile + double-buffered out
    # tile + ~3 live f32/bf16 intermediates of the widest hidden layer.
    per_row = (2 * gin_p * 2) + (2 * gout_p * out_bytes) \
        + 3 * max(w1_p, w2_p, w3_p) * 4

    tile = 8
    for cand in (4096, 2048, 1024, 512, 256, 128, 64, 32, 16, 8):
        if cand * per_row <= budget:
            tile = cand
            break

    b_aligned = _round_up(max(B, 1), 8)
    two_step_cap = max(8, _round_up((b_aligned + 1) // 2, 8))
    return max(8, min(tile, b_aligned, two_step_cap))


def generator_forward(x, prepared, *, tile_b=None, out_dtype=jnp.float32):
    """x: (B, G_in) float32. prepared: output of prepare_generator_params.

    Returns (B, G_out) in `out_dtype` (f32 default, matching the PyTorch
    generator.forward(); pass bf16 to halve output HBM writeback if downstream
    tolerates it).
    """
    B, G_in = x.shape
    g_in0, G_out, _, _, _ = prepared["dims"]
    assert G_in == g_in0, f"expected G_in={g_in0}, got {G_in}"
    gin_p, w1_p, w2_p, w3_p, gout_p = prepared["padded_dims"]

    vmem_cap = _vmem_capacity_bytes()
    out_bytes = jnp.dtype(out_dtype).itemsize

    if tile_b is None:
        tile_b = _pick_tile_b(B, prepared["padded_dims"], out_bytes, vmem_cap)
    tile_b = max(8, _round_up(min(tile_b, _round_up(B, 8)), 8))
    b_p = _round_up(B, tile_b)
    grid = (b_p // tile_b,)

    # Only x is padded / cast per call; weights were prepared once.
    x_p = jnp.pad(x, ((0, b_p - B), (0, gin_p - G_in))).astype(jnp.bfloat16)

    tiled = lambda cols: pl.BlockSpec((tile_b, cols), lambda i: (i, 0))

    def resident_specs(single_buffer):
        # Constant index_map -> the block stays VMEM-resident across the grid.
        def spec(arr):
            if single_buffer:
                return pl.BlockSpec(arr.shape, lambda i: (0, 0),
                                    pipeline_mode=pl.Buffered(1))
            return pl.BlockSpec(arr.shape, lambda i: (0, 0))
        p = prepared
        return [spec(p["w1p"]), spec(p["b1p"]),
                spec(p["w2p"]), spec(p["b2p"]),
                spec(p["w3p"]), spec(p["b3p"]),
                spec(p["wop"]), spec(p["bop"])]

    # Advisory cost estimate (padded shapes).
    weight_bytes = 2 * (gin_p * w1_p + w1_p * w2_p + w2_p * w3_p + w3_p * gout_p)
    bias_bytes = 4 * (w1_p + w2_p + w3_p + gout_p)
    flops = 2 * b_p * (gin_p * w1_p + w1_p * w2_p + w2_p * w3_p + w3_p * gout_p)
    bytes_accessed = x_p.size * 2 + weight_bytes + bias_bytes + b_p * gout_p * out_bytes
    cost = pl.CostEstimate(flops=flops, transcendentals=0,
                           bytes_accessed=bytes_accessed)

    # VMEM limit: footprint with 2x margin, capped at ~75% of physical VMEM
    # (≈48 MiB on v7x, ≈96 MiB on v5e/v6e).
    io_bytes = 2 * tile_b * gin_p * 2 + 2 * tile_b * gout_p * out_bytes
    act_bytes = 3 * tile_b * max(w1_p, w2_p, w3_p) * 4
    vmem_limit = 2 * (2 * weight_bytes + 2 * bias_bytes + io_bytes + act_bytes)
    vmem_limit = int(min(max(vmem_limit, 16 * 1024 * 1024), (vmem_cap * 3) // 4))

    def build(single_buffer):
        return pl.pallas_call(
            _generator_kernel,
            out_shape=jax.ShapeDtypeStruct((b_p, gout_p), out_dtype),
            grid=grid,
            in_specs=[tiled(gin_p)] + resident_specs(single_buffer),
            out_specs=tiled(gout_p),
            compiler_params=pltpu.CompilerParams(
                dimension_semantics=("parallel",),
                vmem_limit_bytes=vmem_limit),
            cost_estimate=cost,
        )

    args = (x_p,
            prepared["w1p"], prepared["b1p"],
            prepared["w2p"], prepared["b2p"],
            prepared["w3p"], prepared["b3p"],
            prepared["wop"], prepared["bop"])

    try:
        out_p = build(single_buffer=True)(*args)
    except Exception:
        # pipeline_mode=pl.Buffered(1) not supported on this jax build ->
        # default double buffering (correct, slightly more VMEM).
        out_p = build(single_buffer=False)(*args)

    if b_p == B and gout_p == G_out:
        return out_p
    return out_p[:B, :G_out]


def _xavier_uniform(key, fan_in, fan_out):
    # torch.nn.init.xavier_uniform_: U(-a, a), a = sqrt(6/(fan_in+fan_out)).
    a = jnp.sqrt(6.0 / (fan_in + fan_out))
    return jax.random.uniform(key, (fan_in, fan_out), jnp.float32, -a, a)


def init_generator_params(key, G_in, G_out, w1, w2, w3):
    ks = jax.random.split(key, 8)
    # Weights stored in (in, out) layout (PyTorch weight transposed), so the
    # kernel computes x @ W + b == PyTorch's x @ W_pt.T + b.
    return {
        "w1": _xavier_uniform(ks[0], G_in, w1),
        "b1": 0.01 * jax.random.normal(ks[1], (1, w1), jnp.float32),
        "w2": _xavier_uniform(ks[2], w1, w2),
        "b2": 0.01 * jax.random.normal(ks[3], (1, w2), jnp.float32),
        "w3": _xavier_uniform(ks[4], w2, w3),
        "b3": 0.01 * jax.random.normal(ks[5], (1, w3), jnp.float32),
        "wo": _xavier_uniform(ks[6], w3, G_out),
        "bo": 0.01 * jax.random.normal(ks[7], (1, G_out), jnp.float32),
    }


def generator_reference(x, p):
    # Same bf16-operand / f32-accumulate numerics as the kernel.
    bf = jnp.bfloat16
    h = jnp.dot(x.astype(bf), p["w1"].astype(bf),
                preferred_element_type=jnp.float32) + p["b1"]
    h = jnp.maximum(h, 0.0)
    h = jnp.dot(h.astype(bf), p["w2"].astype(bf),
                preferred_element_type=jnp.float32) + p["b2"]
    h = jnp.maximum(h, 0.0)
    h = jnp.dot(h.astype(bf), p["w3"].astype(bf),
                preferred_element_type=jnp.float32) + p["b3"]
    h = jnp.maximum(h, 0.0)
    return jnp.dot(h.astype(bf), p["wo"].astype(bf),
                   preferred_element_type=jnp.float32) + p["bo"]


if __name__ == "__main__":
    key = jax.random.PRNGKey(0)
    k_x, k_p = jax.random.split(key)

    # Small shapes consistent with generator(G_in, G_out, w1, w2, w3).
    B, G_in, G_out, W1, W2, W3 = 16, 32, 16, 64, 64, 64

    x = jax.random.normal(k_x, (B, G_in), jnp.float32)
    params = init_generator_params(k_p, G_in, G_out, W1, W2, W3)

    # One-time parameter preparation (padding + bf16 cast hoisted off hot path).
    prepared = prepare_generator_params(params)
    jax.block_until_ready(prepared["w1p"])

    # tile_b auto-derived; with B=16 it becomes 8 -> a 2-step batch grid, so
    # the multi-step (and v7x megacore) path is exercised even at this size.
    y = generator_forward(x, prepared)
    jax.block_until_ready(y)

    y_ref = generator_reference(x, params)
    assert y.shape == (B, G_out)
    assert jnp.allclose(y, y_ref, atol=2e-3, rtol=2e-3), (
        float(jnp.max(jnp.abs(y - y_ref))))

    print("KERNEL_OK")
</pallas_src>

<mosaic_0001>
module attributes {stable_mosaic.version = 11 : i64} {
  func.func @_generator_kernel(%arg0: i32, %arg1: memref<8x128xbf16, #tpu.memory_space<vmem>>, %arg2: memref<128x128xbf16, #tpu.memory_space<vmem>>, %arg3: memref<1x128xf32, #tpu.memory_space<vmem>>, %arg4: memref<128x128xbf16, #tpu.memory_space<vmem>>, %arg5: memref<1x128xf32, #tpu.memory_space<vmem>>, %arg6: memref<128x128xbf16, #tpu.memory_space<vmem>>, %arg7: memref<1x128xf32, #tpu.memory_space<vmem>>, %arg8: memref<128x128xbf16, #tpu.memory_space<vmem>>, %arg9: memref<1x128xf32, #tpu.memory_space<vmem>>, %arg10: memref<8x128xf32, #tpu.memory_space<vmem>>) attributes {dimension_semantics = [#tpu.dimension_semantics<parallel>], iteration_bounds = array<i64: 2>, scalar_prefetch = 0 : i64, scratch_operands = 0 : i64, tpu.core_type = #tpu.core_type<tc>, window_params = [{transform_indices = @transform_0, window_bounds = array<i64: 8, 128>}, {pipeline_mode = #tpu.pipeline_mode<synchronous>, transform_indices = @transform_1, window_bounds = array<i64: 128, 128>}, {pipeline_mode = #tpu.pipeline_mode<synchronous>, transform_indices = @transform_2, window_bounds = array<i64: 1, 128>}, {pipeline_mode = #tpu.pipeline_mode<synchronous>, transform_indices = @transform_3, window_bounds = array<i64: 128, 128>}, {pipeline_mode = #tpu.pipeline_mode<synchronous>, transform_indices = @transform_4, window_bounds = array<i64: 1, 128>}, {pipeline_mode = #tpu.pipeline_mode<synchronous>, transform_indices = @transform_5, window_bounds = array<i64: 128, 128>}, {pipeline_mode = #tpu.pipeline_mode<synchronous>, transform_indices = @transform_6, window_bounds = array<i64: 1, 128>}, {pipeline_mode = #tpu.pipeline_mode<synchronous>, transform_indices = @transform_7, window_bounds = array<i64: 128, 128>}, {pipeline_mode = #tpu.pipeline_mode<synchronous>, transform_indices = @transform_8, window_bounds = array<i64: 1, 128>}, {transform_indices = @transform_9, window_bounds = array<i64: 8, 128>}]} {
    %c0 = arith.constant 0 : index
    %c0_0 = arith.constant 0 : index
    %0 = vector.load %arg1[%c0, %c0_0] : memref<8x128xbf16, #tpu.memory_space<vmem>>, vector<8x128xbf16>
    %c0_1 = arith.constant 0 : index
    %c0_2 = arith.constant 0 : index
    %1 = vector.load %arg2[%c0_1, %c0_2] : memref<128x128xbf16, #tpu.memory_space<vmem>>, vector<128x128xbf16>
    %cst = arith.constant dense<0.000000e+00> : vector<8x128xf32>
    %2 = tpu.matmul %0, %1, %cst {dimension_numbers = #tpu.dot_dimension_numbers<[1], [0], [0], [1], [0, 0, 1, 1], [], []>} : vector<8x128xbf16>, vector<128x128xbf16>, vector<8x128xf32> -> vector<8x128xf32>
    %c0_3 = arith.constant 0 : index
    %c0_4 = arith.constant 0 : index
    %3 = vector.load %arg3[%c0_3, %c0_4] : memref<1x128xf32, #tpu.memory_space<vmem>>, vector<1x128xf32>
    %4 = vector.broadcast %3 : vector<1x128xf32> to vector<8x128xf32>
    %5 = arith.addf %2, %4 : vector<8x128xf32>
    %cst_5 = arith.constant 0.000000e+00 : f32
    %6 = vector.broadcast %cst_5 : f32 to vector<8x128xf32>
    %7 = arith.maximumf %5, %6 : vector<8x128xf32>
    %8 = arith.truncf %7 : vector<8x128xf32> to vector<8x128xbf16>
    %c0_6 = arith.constant 0 : index
    %c0_7 = arith.constant 0 : index
    %9 = vector.load %arg4[%c0_6, %c0_7] : memref<128x128xbf16, #tpu.memory_space<vmem>>, vector<128x128xbf16>
    %cst_8 = arith.constant dense<0.000000e+00> : vector<8x128xf32>
    %10 = tpu.matmul %8, %9, %cst_8 {dimension_numbers = #tpu.dot_dimension_numbers<[1], [0], [0], [1], [0, 0, 1, 1], [], []>} : vector<8x128xbf16>, vector<128x128xbf16>, vector<8x128xf32> -> vector<8x128xf32>
    %c0_9 = arith.constant 0 : index
    %c0_10 = arith.constant 0 : index
    %11 = vector.load %arg5[%c0_9, %c0_10] : memref<1x128xf32, #tpu.memory_space<vmem>>, vector<1x128xf32>
    %12 = vector.broadcast %11 : vector<1x128xf32> to vector<8x128xf32>
    %13 = arith.addf %10, %12 : vector<8x128xf32>
    %cst_11 = arith.constant 0.000000e+00 : f32
    %14 = vector.broadcast %cst_11 : f32 to vector<8x128xf32>
    %15 = arith.maximumf %13, %14 : vector<8x128xf32>
    %16 = arith.truncf %15 : vector<8x128xf32> to vector<8x128xbf16>
    %c0_12 = arith.constant 0 : index
    %c0_13 = arith.constant 0 : index
    %17 = vector.load %arg6[%c0_12, %c0_13] : memref<128x128xbf16, #tpu.memory_space<vmem>>, vector<128x128xbf16>
    %cst_14 = arith.constant dense<0.000000e+00> : vector<8x128xf32>
    %18 = tpu.matmul %16, %17, %cst_14 {dimension_numbers = #tpu.dot_dimension_numbers<[1], [0], [0], [1], [0, 0, 1, 1], [], []>} : vector<8x128xbf16>, vector<128x128xbf16>, vector<8x128xf32> -> vector<8x128xf32>
    %c0_15 = arith.constant 0 : index
    %c0_16 = arith.constant 0 : index
    %19 = vector.load %arg7[%c0_15, %c0_16] : memref<1x128xf32, #tpu.memory_space<vmem>>, vector<1x128xf32>
    %20 = vector.broadcast %19 : vector<1x128xf32> to vector<8x128xf32>
    %21 = arith.addf %18, %20 : vector<8x128xf32>
    %cst_17 = arith.constant 0.000000e+00 : f32
    %22 = vector.broadcast %cst_17 : f32 to vector<8x128xf32>
    %23 = arith.maximumf %21, %22 : vector<8x128xf32>
    %24 = arith.truncf %23 : vector<8x128xf32> to vector<8x128xbf16>
    %c0_18 = arith.constant 0 : index
    %c0_19 = arith.constant 0 : index
    %25 = vector.load %arg8[%c0_18, %c0_19] : memref<128x128xbf16, #tpu.memory_space<vmem>>, vector<128x128xbf16>
    %cst_20 = arith.constant dense<0.000000e+00> : vector<8x128xf32>
    %26 = tpu.matmul %24, %25, %cst_20 {dimension_numbers = #tpu.dot_dimension_numbers<[1], [0], [0], [1], [0, 0, 1, 1], [], []>} : vector<8x128xbf16>, vector<128x128xbf16>, vector<8x128xf32> -> vector<8x128xf32>
    %c0_21 = arith.constant 0 : index
    %c0_22 = arith.constant 0 : index
    %27 = vector.load %arg9[%c0_21, %c0_22] : memref<1x128xf32, #tpu.memory_space<vmem>>, vector<1x128xf32>
    %28 = vector.broadcast %27 : vector<1x128xf32> to vector<8x128xf32>
    %29 = arith.addf %26, %28 : vector<8x128xf32>
    %c0_23 = arith.constant 0 : index
    %c0_24 = arith.constant 0 : index
    %30 = vector.load %arg10[%c0_23, %c0_24] : memref<8x128xf32, #tpu.memory_space<vmem>>, vector<8x128xf32>
    tpu.vector_store %arg10[%c0_23, %c0_24], %29 {strides = array<i32>} : memref<8x128xf32, #tpu.memory_space<vmem>>, vector<8x128xf32>,
    return
  }
  func.func @transform_0(%arg0: i32) -> (i32, i32) {
    %c0_i32 = arith.constant 0 : i32
    %c0_i32_0 = arith.constant 0 : i32
    return %arg0, %c0_i32 : i32, i32
  }
  func.func @transform_1(%arg0: i32) -> (i32, i32) {
    %c0_i32 = arith.constant 0 : i32
    %c0_i32_0 = arith.constant 0 : i32
    %c0_i32_1 = arith.constant 0 : i32
    return %c0_i32, %c0_i32_0 : i32, i32
  }
  func.func @transform_2(%arg0: i32) -> (i32, i32) {
    %c0_i32 = arith.constant 0 : i32
    %c0_i32_0 = arith.constant 0 : i32
    %c0_i32_1 = arith.constant 0 : i32
    return %c0_i32, %c0_i32_0 : i32, i32
  }
  func.func @transform_3(%arg0: i32) -> (i32, i32) {
    %c0_i32 = arith.constant 0 : i32
    %c0_i32_0 = arith.constant 0 : i32
    %c0_i32_1 = arith.constant 0 : i32
    return %c0_i32, %c0_i32_0 : i32, i32
  }
  func.func @transform_4(%arg0: i32) -> (i32, i32) {
    %c0_i32 = arith.constant 0 : i32
    %c0_i32_0 = arith.constant 0 : i32
    %c0_i32_1 = arith.constant 0 : i32
    return %c0_i32, %c0_i32_0 : i32, i32
  }
  func.func @transform_5(%arg0: i32) -> (i32, i32) {
    %c0_i32 = arith.constant 0 : i32
    %c0_i32_0 = arith.constant 0 : i32
    %c0_i32_1 = arith.constant 0 : i32
    return %c0_i32, %c0_i32_0 : i32, i32
  }
  func.func @transform_6(%arg0: i32) -> (i32, i32) {
    %c0_i32 = arith.constant 0 : i32
    %c0_i32_0 = arith.constant 0 : i32
    %c0_i32_1 = arith.constant 0 : i32
    return %c0_i32, %c0_i32_0 : i32, i32
  }
  func.func @transform_7(%arg0: i32) -> (i32, i32) {
    %c0_i32 = arith.constant 0 : i32
    %c0_i32_0 = arith.constant 0 : i32
    %c0_i32_1 = arith.constant 0 : i32
    return %c0_i32, %c0_i32_0 : i32, i32
  }
  func.func @transform_8(%arg0: i32) -> (i32, i32) {
    %c0_i32 = arith.constant 0 : i32
    %c0_i32_0 = arith.constant 0 : i32
    %c0_i32_1 = arith.constant 0 : i32
    return %c0_i32, %c0_i32_0 : i32, i32
  }
  func.func @transform_9(%arg0: i32) -> (i32, i32) {
    %c0_i32 = arith.constant 0 : i32
    %c0_i32_0 = arith.constant 0 : i32
    return %arg0, %c0_i32 : i32, i32
  }
}

module attributes {stable_mosaic.version = 11 : i64} {
  func.func @_generator_kernel(%arg0: i32, %arg1: memref<8x128xbf16, #tpu.memory_space<vmem>>, %arg2: memref<128x128xbf16, #tpu.memory_space<vmem>>, %arg3: memref<1x128xf32, #tpu.memory_space<vmem>>, %arg4: memref<128x128xbf16, #tpu.memory_space<vmem>>, %arg5: memref<1x128xf32, #tpu.memory_space<vmem>>, %arg6: memref<128x128xbf16, #tpu.memory_space<vmem>>, %arg7: memref<1x128xf32, #tpu.memory_space<vmem>>, %arg8: memref<128x128xbf16, #tpu.memory_space<vmem>>, %arg9: memref<1x128xf32, #tpu.memory_space<vmem>>, %arg10: memref<8x128xf32, #tpu.memory_space<vmem>>) attributes {dimension_semantics = [#tpu.dimension_semantics<parallel>], iteration_bounds = array<i64: 2>, scalar_prefetch = 0 : i64, scratch_operands = 0 : i64, tpu.core_type = #tpu.core_type<tc>, window_params = [{transform_indices = @transform_0, window_bounds = array<i64: 8, 128>}, {pipeline_mode = #tpu.pipeline_mode<synchronous>, transform_indices = @transform_1, window_bounds = array<i64: 128, 128>}, {pipeline_mode = #tpu.pipeline_mode<synchronous>, transform_indices = @transform_2, window_bounds = array<i64: 1, 128>}, {pipeline_mode = #tpu.pipeline_mode<synchronous>, transform_indices = @transform_3, window_bounds = array<i64: 128, 128>}, {pipeline_mode = #tpu.pipeline_mode<synchronous>, transform_indices = @transform_4, window_bounds = array<i64: 1, 128>}, {pipeline_mode = #tpu.pipeline_mode<synchronous>, transform_indices = @transform_5, window_bounds = array<i64: 128, 128>}, {pipeline_mode = #tpu.pipeline_mode<synchronous>, transform_indices = @transform_6, window_bounds = array<i64: 1, 128>}, {pipeline_mode = #tpu.pipeline_mode<synchronous>, transform_indices = @transform_7, window_bounds = array<i64: 128, 128>}, {pipeline_mode = #tpu.pipeline_mode<synchronous>, transform_indices = @transform_8, window_bounds = array<i64: 1, 128>}, {transform_indices = @transform_9, window_bounds = array<i64: 8, 128>}]} {
    %c0 = arith.constant 0 : index
    %c0_0 = arith.constant 0 : index
    %0 = vector.load %arg1[%c0, %c0_0] : memref<8x128xbf16, #tpu.memory_space<vmem>>, vector<8x128xbf16>
    %c0_1 = arith.constant 0 : index
    %c0_2 = arith.constant 0 : index
    %1 = vector.load %arg2[%c0_1, %c0_2] : memref<128x128xbf16, #tpu.memory_space<vmem>>, vector<128x128xbf16>
    %cst = arith.constant dense<0.000000e+00> : vector<8x128xf32>
    %2 = tpu.matmul %0, %1, %cst {dimension_numbers = #tpu.dot_dimension_numbers<[1], [0], [0], [1], [0, 0, 1, 1], [], []>} : vector<8x128xbf16>, vector<128x128xbf16>, vector<8x128xf32> -> vector<8x128xf32>
    %c0_3 = arith.constant 0 : index
    %c0_4 = arith.constant 0 : index
    %3 = vector.load %arg3[%c0_3, %c0_4] : memref<1x128xf32, #tpu.memory_space<vmem>>, vector<1x128xf32>
    %4 = vector.broadcast %3 : vector<1x128xf32> to vector<8x128xf32>
    %5 = arith.addf %2, %4 : vector<8x128xf32>
    %cst_5 = arith.constant 0.000000e+00 : f32
    %6 = vector.broadcast %cst_5 : f32 to vector<8x128xf32>
    %7 = arith.maximumf %5, %6 : vector<8x128xf32>
    %8 = arith.truncf %7 : vector<8x128xf32> to vector<8x128xbf16>
    %c0_6 = arith.constant 0 : index
    %c0_7 = arith.constant 0 : index
    %9 = vector.load %arg4[%c0_6, %c0_7] : memref<128x128xbf16, #tpu.memory_space<vmem>>, vector<128x128xbf16>
    %cst_8 = arith.constant dense<0.000000e+00> : vector<8x128xf32>
    %10 = tpu.matmul %8, %9, %cst_8 {dimension_numbers = #tpu.dot_dimension_numbers<[1], [0], [0], [1], [0, 0, 1, 1], [], []>} : vector<8x128xbf16>, vector<128x128xbf16>, vector<8x128xf32> -> vector<8x128xf32>
    %c0_9 = arith.constant 0 : index
    %c0_10 = arith.constant 0 : index
    %11 = vector.load %arg5[%c0_9, %c0_10] : memref<1x128xf32, #tpu.memory_space<vmem>>, vector<1x128xf32>
    %12 = vector.broadcast %11 : vector<1x128xf32> to vector<8x128xf32>
    %13 = arith.addf %10, %12 : vector<8x128xf32>
    %cst_11 = arith.constant 0.000000e+00 : f32
    %14 = vector.broadcast %cst_11 : f32 to vector<8x128xf32>
    %15 = arith.maximumf %13, %14 : vector<8x128xf32>
    %16 = arith.truncf %15 : vector<8x128xf32> to vector<8x128xbf16>
    %c0_12 = arith.constant 0 : index
    %c0_13 = arith.constant 0 : index
    %17 = vector.load %arg6[%c0_12, %c0_13] : memref<128x128xbf16, #tpu.memory_space<vmem>>, vector<128x128xbf16>
    %cst_14 = arith.constant dense<0.000000e+00> : vector<8x128xf32>
    %18 = tpu.matmul %16, %17, %cst_14 {dimension_numbers = #tpu.dot_dimension_numbers<[1], [0], [0], [1], [0, 0, 1, 1], [], []>} : vector<8x128xbf16>, vector<128x128xbf16>, vector<8x128xf32> -> vector<8x128xf32>
    %c0_15 = arith.constant 0 : index
    %c0_16 = arith.constant 0 : index
    %19 = vector.load %arg7[%c0_15, %c0_16] : memref<1x128xf32, #tpu.memory_space<vmem>>, vector<1x128xf32>
    %20 = vector.broadcast %19 : vector<1x128xf32> to vector<8x128xf32>
    %21 = arith.addf %18, %20 : vector<8x128xf32>
    %cst_17 = arith.constant 0.000000e+00 : f32
    %22 = vector.broadcast %cst_17 : f32 to vector<8x128xf32>
    %23 = arith.maximumf %21, %22 : vector<8x128xf32>
    %24 = arith.truncf %23 : vector<8x128xf32> to vector<8x128xbf16>
    %c0_18 = arith.constant 0 : index
    %c0_19 = arith.constant 0 : index
    %25 = vector.load %arg8[%c0_18, %c0_19] : memref<128x128xbf16, #tpu.memory_space<vmem>>, vector<128x128xbf16>
    %cst_20 = arith.constant dense<0.000000e+00> : vector<8x128xf32>
    %26 = tpu.matmul %24, %25, %cst_20 {dimension_numbers = #tpu.dot_dimension_numbers<[1], [0], [0], [1], [0, 0, 1, 1], [], []>} : vector<8x128xbf16>, vector<128x128xbf16>, vector<8x128xf32> -> vector<8x128xf32>
    %c0_21 = arith.constant 0 : index
    %c0_22 = arith.constant 0 : index
    %27 = vector.load %arg9[%c0_21, %c0_22] : memref<1x128xf32, #tpu.memory_space<vmem>>, vector<1x128xf32>
    %28 = vector.broadcast %27 : vector<1x128xf32> to vector<8x128xf32>
    %29 = arith.addf %26, %28 : vector<8x128xf32>
    %c0_23 = arith.constant 0 : index
    %c0_24 = arith.constant 0 : index
    %30 = vector.load %arg10[%c0_23, %c0_24] : memref<8x128xf32, #tpu.memory_space<vmem>>, vector<8x128xf32>
    tpu.vector_store %arg10[%c0_23, %c0_24], %29 {strides = array<i32>} : memref<8x128xf32, #tpu.memory_space<vmem>>, vector<8x128xf32>,
    return
  }
  func.func @transform_0(%arg0: i32) -> (i32, i32) {
    %c0_i32 = arith.constant 0 : i32
    %c0_i32_0 = arith.constant 0 : i32
    return %arg0, %c0_i32 : i32, i32
  }
  func.func @transform_1(%arg0: i32) -> (i32, i32) {
    %c0_i32 = arith.constant 0 : i32
    %c0_i32_0 = arith.constant 0 : i32
    %c0_i32_1 = arith.constant 0 : i32
    return %c0_i32, %c0_i32_0 : i32, i32
  }
  func.func @transform_2(%arg0: i32) -> (i32, i32) {
    %c0_i32 = arith.constant 0 : i32
    %c0_i32_0 = arith.constant 0 : i32
    %c0_i32_1 = arith.constant 0 : i32
    return %c0_i32, %c0_i32_0 : i32, i32
  }
  func.func @transform_3(%arg0: i32) -> (i32, i32) {
    %c0_i32 = arith.constant 0 : i32
    %c0_i32_0 = arith.constant 0 : i32
    %c0_i32_1 = arith.constant 0 : i32
    return %c0_i32, %c0_i32_0 : i32, i32
  }
  func.func @transform_4(%arg0: i32) -> (i32, i32) {
    %c0_i32 = arith.constant 0 : i32
    %c0_i32_0 = arith.constant 0 : i32
    %c0_i32_1 = arith.constant 0 : i32
    return %c0_i32, %c0_i32_0 : i32, i32
  }
  func.func @transform_5(%arg0: i32) -> (i32, i32) {
    %c0_i32 = arith.constant 0 : i32
    %c0_i32_0 = arith.constant 0 : i32
    %c0_i32_1 = arith.constant 0 : i32
    return %c0_i32, %c0_i32_0 : i32, i32
  }
  func.func @transform_6(%arg0: i32) -> (i32, i32) {
    %c0_i32 = arith.constant 0 : i32
    %c0_i32_0 = arith.constant 0 : i32
    %c0_i32_1 = arith.constant 0 : i32
    return %c0_i32, %c0_i32_0 : i32, i32
  }
  func.func @transform_7(%arg0: i32) -> (i32, i32) {
    %c0_i32 = arith.constant 0 : i32
    %c0_i32_0 = arith.constant 0 : i32
    %c0_i32_1 = arith.constant 0 : i32
    return %c0_i32, %c0_i32_0 : i32, i32
  }
  func.func @transform_8(%arg0: i32) -> (i32, i32) {
    %c0_i32 = arith.constant 0 : i32
    %c0_i32_0 = arith.constant 0 : i32
    %c0_i32_1 = arith.constant 0 : i32
    return %c0_i32, %c0_i32_0 : i32, i32
  }
  func.func @transform_9(%arg0: i32) -> (i32, i32) {
    %c0_i32 = arith.constant 0 : i32
    %c0_i32_0 = arith.constant 0 : i32
    return %arg0, %c0_i32 : i32, i32
  }
}

</mosaic_0001>

<bundles_post_ra>
// kernel: tpu_custom_call.1
= control target key start
LH: loop header
LB: loop body
LE: loop exit
PB: predicated region body
PF: predicated region fallthrough
CT: control target
= control target key end

     0   :  { %s1610_s0 = inlined_call_operand.hbm [shape: bf16[16,128], index: 0, kind: input, shape index: {}]   ;;  %s1611_s1 = inlined_call_operand.hbm [shape: bf16[128,128], index: 1, kind: input, shape index: {}]   ;;  %s1612_s2 = inlined_call_operand.vmem [shape: f32[1,128], index: 2, kind: input, shape index: {}]   ;;  %s1613_s3 = inlined_call_operand.hbm [shape: bf16[128,128], index: 3, kind: input, shape index: {}]   ;;  %s1614_s4 = inlined_call_operand.vmem [shape: f32[1,128], index: 4, kind: input, shape index: {}]   ;;  %s1615_s5 = inlined_call_operand.hbm [shape: bf16[128,128], index: 5, kind: input, shape index: {}]   ;;  %s1616_s6 = inlined_call_operand.vmem [shape: f32[1,128], index: 6, kind: input, shape index: {}]   ;;  %s1617_s7 = inlined_call_operand.hbm [shape: bf16[128,128], index: 7, kind: input, shape index: {}]   ;;  %s1618_s8 = inlined_call_operand.vmem [shape: f32[1,128], index: 8, kind: input, shape index: {}]   ;;  %s1619_s9 = inlined_call_operand.hbm [shape: f32[16,128], index: 9, kind: output, shape index: {}]  }
   0x1   :  { %1620 = sst [smem:[#allocation16_spill]] %s1611_s1 }
   0x2   :  { %1621 = sst [smem:[#allocation17_spill]] %s1613_s3 }
   0x3   :  { %1622 = sst [smem:[#allocation18_spill]] %s1615_s5 }
   0x4   :  { %1623 = sst [smem:[#allocation19_spill]] %s1617_s7 }
   0x5   :  { %14 = vsyncpa [#allocation3], 0 }
   0x6   :  { %16 = vsyncpa [#allocation3 + $0x1], 0 }
   0x7   :  { %17 = vsyncpa [#allocation6], 0 }
   0x8   :  { %18 = vsyncpa [#allocation9], 0 }
   0x9   :  { %19 = vsyncpa [#allocation4], 0 }
   0xa   :  { %21 = vsyncpa [#allocation4 + $0x1], 0  ;;  %s1427_s30 = smov 0   ;;  %s1429_s10 = smov 0  }
   0xb   :  { %s1431_s11 = smov 0   ;;  %s1433_s12 = smov 0  }
   0xc LB: > { %s1624_s1 = sld [smem:[#allocation16_spill]]  ;;  %s1451_s16 = sadd.s32 4294967295, %s1369_s12   ;;  %s1369_s12 = sphi %s1433_s12, %s1639_s12   ;;  %s1365_s11 = sphi %s1431_s11, %s1638_s11   ;;  %s1361_s10 = sphi %s1429_s10, %s1637_s10   ;;  %s1357_s30 = sphi %s1427_s30, %s1636_s30  }
   0xd   : > { %p873_p0 = scmp.ge.s32.totalorder %s1369_s12, 1  ;;  %p48_p1 = scmp.eq.s32.totalorder %s1451_s16, 0 }
   0xe   : > { %p252_p2 = scmp.lt.s32.totalorder %s1369_s12, 3  ;;  %s1371_s18 = smov [#allocation5]  }
   0xf   : > { %s265_s19 = sshll.u32 %s1371_s18, 4  ;;  %s1626_s5 = sld [smem:[#allocation18_spill]]  ;;  %s266_s19 = int_to_ptr.vmem [resolvable:$true] %s265_s19 }
  0x10   : > { %p1456_p3 = pnand %p873_p0, %p252_p2  ;;  %s1628_s3 = sld [smem:[#allocation17_spill]] }
  0x11   : > { %s1372_s27 = smov [#allocation8]   ;;  %s1373_s29 = smov 64  }
  0x12   : > { %s263_s15 = sshll.u32 %s1624_s1, 4  ;;  %p1072_p4 = pneg %p1456_p3  ;;  %s264_s15 = int_to_ptr.hbm [resolvable:$true] %s263_s15 }
  0x13   : > { %s299_s28 = sshll.u32 %s1372_s27, 4  ;;  %s1374_s13 = smov 4   ;;  %s300_s28 = int_to_ptr.vmem [resolvable:$true] %s299_s28 }
  0x14   : > { %p1468_p6 = pnand %p1072_p4, %p48_p1  ;;  %s1629_s7 = sld [smem:[#allocation19_spill]] }
  0x15   : > { %s297_s22 = sshll.u32 %s1626_s5, 4  ;;  %s1375_s21 = smov [#allocation7]   ;;  %s298_s22 = int_to_ptr.hbm [resolvable:$true] %s297_s22 }
  0x16   : > { %s280_s26 = sshll.u32 %s1628_s3, 4  ;;  %s282_s24 = sshll.u32 %s1375_s21, 4  ;;  %s281_s26 = int_to_ptr.hbm [resolvable:$true] %s280_s26  ;;  %s283_s24 = int_to_ptr.vmem [resolvable:$true] %s282_s24 }
  0x17   : > { %1075 = dma.hbm_to_vmem [thread:$0]  (!%p1468_p6), %s264_s15, 1024, %s266_s19, [#allocation6], %s1373_s29, %s1373_s29, %s1374_s13  }
  0x18   : > { %1081 = dma.hbm_to_vmem [thread:$0]  (!%p1468_p6), %s298_s22, 1024, %s300_s28, [#allocation9], %s1373_s29, %s1373_s29, %s1374_s13  }
  0x19   : > { %1078 = dma.hbm_to_vmem [thread:$0]  (!%p1468_p6), %s281_s26, 1024, %s283_s24, [#allocation6], %s1373_s29, %s1373_s29, %s1374_s13  }
  0x1a   : > { %s314_s20 = sshll.u32 %s1629_s7, 4  ;;  %s1376_s15 = smov [#allocation10]   ;;  %s315_s20 = int_to_ptr.hbm [resolvable:$true] %s314_s20 }
  0x1b   : > { %s316_s19 = sshll.u32 %s1376_s15, 4  ;;  %s872_s22 = sadd.s32 4294967294, %s1369_s12   ;;  %s317_s19 = int_to_ptr.vmem [resolvable:$true] %s316_s19 }
  0x1c   : > { %1084 = dma.hbm_to_vmem [thread:$0]  (!%p1468_p6), %s315_s20, 1024, %s317_s19, [#allocation9], %s1373_s29, %s1373_s29, %s1374_s13  }
  0x1d   : > { %s1488_s25 = sadd.s32 1, %s1369_s12   ;;  %s34_s28 = sadd.s32 1, %s1365_s11 }
  0x1e   : > { %s31_s27 = ssub.s32 %s1369_s12, %s1488_s25  ;;  %p41_p8 = scmp.ne.s32.totalorder %s1365_s11, %s1361_s10 }
  0x1f   : > { %p32_p7 = scmp.eq.s32.totalorder %s31_s27, 0  ;;  %p42_p9 = scmp.eq.s32.totalorder %s1369_s12, 0 }
  0x20   : > { %p47_p10 = scmp.ne.s32.totalorder %s1361_s10, %s1357_s30  ;;  %p239_p13 = scmp.eq.s32.totalorder %s1451_s16, 1 }
  0x21   : > { %s1499_s26 = scalar_select %p32_p7, %s1365_s11, %s34_s28  }
  0x22   : > { %p1501_p11 = por %p42_p9, %p41_p8  ;;  %p1507_p12 = por %p48_p1, %p47_p10 }
  0x23   : > { %p245_p0 = scmp.eq.s32.totalorder %s872_s22, 1  ;;  %p1097_p2 = scmp.lt.s32.totalorder %s1369_s12, 2 }
  0x24   : > { %s333_s29 = sand.u32 1, %s1365_s11   ;;  %p1514_p4 = por %p239_p13, %p41_p8 }
  0x25   : > { %p1518_p6 = por %p245_p0, %p47_p10  ;;  %s879_s20 = sshll.u32 %s333_s29, 2 }
  0x26   : > { %s880_s21 = sshll.u32 %s1369_s12, 2  ;;  %s337_s27 = scalar_lea.vmem [#allocation2], %s879_s20 }
  0x27   : > { %s341_s19 = scalar_lea.hbm %s1610_s0, %s880_s21  ;;  %s345_s28 = sshll.u32 %s337_s27, 4  ;;  %s346_s28 = int_to_ptr.vmem [resolvable:$true] %s345_s28 }
  0x28   : > { %s343_s1 = sshll.u32 %s341_s19, 4  ;;  %p1528_p7 = pnand %p1097_p2, %p1501_p11  ;;  %s344_s1 = int_to_ptr.hbm [resolvable:$true] %s343_s1 }
  0x29   : > { %s334_s3 = scalar_lea.sflag [#allocation3], %s333_s29  ;;  %s1265_s5 = sshra.s32 %s344_s1, 4  ;;  %s1266_s5 = int_to_ptr.hbm [resolvable:$true] %s1265_s5 }
  0x2a   : > { %s1267_s7 = scalar_lea.hbm %s1266_s5, 4  ;;  %p1269_p9 = pneg %p1528_p7 }
  0x2b   : > { %p1268_p8 = scmp.ne.s32.totalorder %s1266_s5, %s1267_s7  ;;  %s1272_s24 = scalar_lea.hbm %s1610_s0, 8 }
  0x2c   : > { %p1273_p11 = scmp.lt.s32.totalorder %s1266_s5, %s1610_s0  ;;  %p1274_p0 = scmp.lt.s32.totalorder %s1272_s24, %s1267_s7 }
  0x2d   : > { %p1270_p10 = pnand %p1269_p9, %p1268_p8 }
  0x2e   : > { %p1275_p2 = por %p1274_p0, %p1273_p11 }
  0x2f   : > { %p1271_p13 = pneg %p1270_p10 }
  0x31   : > { %p1276_p5 = pnand %p1275_p2, %p1271_p13 }
  0x33   : > { %1279 = shalt.err (!%p1276_p5)
}
  0x34   : > { %1088 = dma.hbm_to_vmem [thread:$0]  (!%p1528_p7), %s344_s1, 64, %s346_s28, %s334_s3  }
  0x35   : > { %354 = sbr.rel (%p1456_p3) target bundleno = 637 (0x27d), region = 56  ;;  %s1545_s29 = sand.u32 (!%p1456_p3), 1, %s1361_s10  }
  0x36   : > { %s882_s19 = sshll.u32 (!%p1456_p3), %s1545_s29, 2  ;;  %s357_s27 = scalar_lea.sflag (!%p1456_p3), [#allocation3], %s1545_s29 }
  0x37   : > { %s1549_s20 = scalar_lea.vmem (!%p1456_p3), [#allocation2], %s882_s19 }
  0x3a   : > { %1340 = dma.done.wait (%p1507_p12), %s357_s27, 64  }
  0x3b   : > { %1342 = vsyncadd (%p1507_p12), %s357_s27, 4294967232 }
  0x3c   : > { %1344 = dma.done.wait (%p48_p1), [#allocation6], 2048  }
  0x3d   : > { %1346 = vsyncadd (%p48_p1), [#allocation6], 4294965248 }
  0x3e   : > { %1348 = dma.done.wait (%p48_p1), [#allocation9], 2048  }
  0x3f   : > { %1350 = vsyncadd (%p48_p1), [#allocation9], 4294965248  ;;  %v1027_v0 = vld [vmem:[#allocation5 + $0x38] sm:$0xff]  ;;  %v1026_v1 = vld [vmem:[#allocation5 + $0x30] sm:$0xff]  ;;  %s1017_s28 = sshll.u32 %s1451_s16, 3  ;;  %s887_s22 = sshll.u32 %s1545_s29, 3 }
  0x40   : > { %485 = vmatpush.bf16.msra.mxu0 %v1027_v0  ;;  %v1035_v2 = vld [vmem:[#allocation7 + $0x38] sm:$0xff]  ;;  %v1034_v3 = vld [vmem:[#allocation7 + $0x30] sm:$0xff]  ;;  %v1025_v4 = vld [vmem:[#allocation5 + $0x28] sm:$0xff]  ;;  %s759_s15 = scalar_lea.hbm %s1619_s9, %s1017_s28  ;;  %s415_s27 = scalar_lea.vmem [#allocation11], %s887_s22 }
  0x41   : > { %568 = vmatpush.bf16.msra.mxu1 %v1035_v2  ;;  %v1033_v5 = vld [vmem:[#allocation7 + $0x28] sm:$0xff]  ;;  %v1024_v6 = vld [vmem:[#allocation5 + $0x20] sm:$0xff]  ;;  %v1023_v8 = vld [vmem:[#allocation5 + $0x18] sm:$0xff]  ;;  %s763_s1 = sshll.u32 %s759_s15, 4  ;;  %s749_s3 = scalar_lea.sflag [#allocation4], %s1545_s29  ;;  %s764_s1 = int_to_ptr.hbm [resolvable:$true] %s763_s1 }
  0x42   : > { %v1032_v7 = vld [vmem:[#allocation7 + $0x20] sm:$0xff]  ;;  %v1031_v9 = vld [vmem:[#allocation7 + $0x18] sm:$0xff]  ;;  %v1022_v10 = vld [vmem:[#allocation5 + $0x10] sm:$0xff]  ;;  %s1309_s16 = sshra.s32 %s764_s1, 4  ;;  %s1315_s23 = scalar_lea.hbm %s1619_s9, 16  ;;  %s1310_s16 = int_to_ptr.hbm [resolvable:$true] %s1309_s16 }
  0x43   : > { %v1030_v11 = vld [vmem:[#allocation7 + $0x10] sm:$0xff]  ;;  %v1021_v12 = vld [vmem:[#allocation5 + $0x8] sm:$0xff]  ;;  %v1020_v13 = vld [vmem:[#allocation5] sm:$0xff]  ;;  %s1311_s5 = scalar_lea.hbm %s1310_s16, 8  ;;  %p1316_p12 = scmp.lt.s32.totalorder %s1310_s16, %s1619_s9 }
  0x44   : > { %486 = vmatpush.bf16.msra.mxu0 %v1026_v1  ;;  %v416_v14 = vld [vmem:[%s1549_s20] sm:$0xf]  ;;  %v1029_v15 = vld [vmem:[#allocation7 + $0x8] sm:$0xff]  ;;  %v1028_v16 = vld [vmem:[#allocation7] sm:$0xff]  ;;  %s761_s20 = sshll.u32 %s415_s27, 4  ;;  %p1312_p1 = scmp.ne.s32.totalorder %s1310_s16, %s1311_s5  ;;  %s762_s20 = int_to_ptr.vmem [resolvable:$true] %s761_s20 }
  0x45   : > { %569 = vmatpush.bf16.msra.mxu1 %v1034_v3  ;;  %v1043_v17 = vld [vmem:[#allocation8 + $0x38] sm:$0xff]  ;;  %v1042_v18 = vld [vmem:[#allocation8 + $0x30] sm:$0xff]  ;;  %v1041_v19 = vld [vmem:[#allocation8 + $0x28] sm:$0xff]  ;;  %p1317_p7 = scmp.lt.s32.totalorder %s1315_s23, %s1311_s5 }
  0x46   : > { %651 = vmatpush.bf16.msra.mxu2 %v1043_v17  ;;  %v1040_v20 = vld [vmem:[#allocation8 + $0x20] sm:$0xff]  ;;  %v1039_v21 = vld [vmem:[#allocation8 + $0x18] sm:$0xff]  ;;  %v1038_v22 = vld [vmem:[#allocation8 + $0x10] sm:$0xff]  ;;  %p1313_p3 = pnand %p1312_p1, %p1514_p4 }
  0x47   : > { %v1141_v23 = vld [vmem:[%s1612_s2] ss:$0 sm:$0xff]  ;;  %v1037_v29 = vld [vmem:[#allocation8 + $0x8] sm:$0xff]  ;;  %v1036_v30 = vld [vmem:[#allocation8] sm:$0xff]  ;;  %p1318_p8 = por %p1317_p7, %p1316_p12 }
  0x48   : > { %487 = vmatpush.bf16.msra.mxu0 %v1025_v4  ;;  %v1051_v31 = vld [vmem:[#allocation10 + $0x38] sm:$0xff]  ;;  %v1050_v32 = vld [vmem:[#allocation10 + $0x30] sm:$0xff]  ;;  %v1049_v33 = vld [vmem:[#allocation10 + $0x28] sm:$0xff]  ;;  %p1314_p5 = pneg %p1313_p3 }
  0x49   : > { %570 = vmatpush.bf16.msra.mxu1 %v1033_v5  ;;  %734 = vmatpush.bf16.msra.mxu3 %v1051_v31  ;;  %v1048_v34 = vld [vmem:[#allocation10 + $0x20] sm:$0xff]  ;;  %v1047_v35 = vld [vmem:[#allocation10 + $0x18] sm:$0xff]  ;;  %v1046_v36 = vld [vmem:[#allocation10 + $0x10] sm:$0xff] }
  0x4a   : > { %652 = vmatpush.bf16.msra.mxu2 %v1042_v18  ;;  %v1142_v37 = vld [vmem:[%s1614_s4] ss:$0 sm:$0xff]  ;;  %v1045_v43 = vld [vmem:[#allocation10 + $0x8] sm:$0xff]  ;;  %v1044_v44 = vld [vmem:[#allocation10] sm:$0xff]  ;;  %p1319_p9 = pnand %p1318_p8, %p1314_p5 }
  0x4b   : > { %v1143_v45 = vld [vmem:[%s1616_s6] ss:$0 sm:$0xff] }
  0x4c   : > { %488 = vmatpush.bf16.msra.mxu0 %v1024_v6  ;;  %v1144_v51 = vld [vmem:[%s1618_s8] ss:$0 sm:$0xff] }
  0x4d   : > { %571 = vmatpush.bf16.msra.mxu1 %v1032_v7  ;;  %735 = vmatpush.bf16.msra.mxu3 %v1050_v32 }
  0x4e   : > { %653 = vmatpush.bf16.msra.mxu2 %v1041_v19 }
  0x50   : > { %489 = vmatpush.bf16.msra.mxu0 %v1023_v8 }
  0x51   : > { %572 = vmatpush.bf16.msra.mxu1 %v1031_v9  ;;  %736 = vmatpush.bf16.msra.mxu3 %v1049_v33 }
  0x52   : > { %654 = vmatpush.bf16.msra.mxu2 %v1040_v20 }
  0x54   : > { %490 = vmatpush.bf16.msra.mxu0 %v1022_v10 }
  0x55   : > { %573 = vmatpush.bf16.msra.mxu1 %v1030_v11  ;;  %737 = vmatpush.bf16.msra.mxu3 %v1048_v34 }
  0x56   : > { %655 = vmatpush.bf16.msra.mxu2 %v1039_v21 }
  0x58   : > { %491 = vmatpush.bf16.msra.mxu0 %v1021_v12 }
  0x59   : > { %574 = vmatpush.bf16.msra.mxu1 %v1029_v15  ;;  %738 = vmatpush.bf16.msra.mxu3 %v1047_v35 }
  0x5a   : > { %656 = vmatpush.bf16.msra.mxu2 %v1038_v22 }
  0x5c   : > { %492 = vmatpush.bf16.msra.mxu0 %v1020_v13 }
  0x5d   : > { %575 = vmatpush.bf16.msra.mxu1 %v1028_v16  ;;  %739 = vmatpush.bf16.msra.mxu3 %v1046_v36 }
  0x5e   : > { %657 = vmatpush.bf16.msra.mxu2 %v1037_v29 }
  0x5f   : > { %493 = vmatmul.bf16.vlgmr.msra.gmra.mxu0 %v416_v14 }
  0x61   : > { %740 = vmatpush.bf16.msra.mxu3 %v1045_v43 }
  0x62   : > { %658 = vmatpush.bf16.msra.mxu2 %v1036_v30 }
  0x65   : > { %741 = vmatpush.bf16.msra.mxu3 %v1044_v44 }
  0xdc   : > { %v494_v24 = vpop.f32.mrf.mxu0 }
  0xdd   : > { %v495_v25 = vadd.f32 %v1141_v23, %v494_v24 }
  0xdf   : > { %v498_v26 = vmax.f32 %v495_v25, 0.0 }
  0xe1   : > { %v499_v27 = vpack.c.bf16 %v498_v26, %v498_v26 }
  0xe3   : > { %576 = vmatmul.bf16.vlgmr.msra.gmra.mxu1 %v499_v27 }
  0xe4   : > { %v496_v28 = vpop.f32.mrf.mxu0 }
 0x160   : > { %v577_v38 = vpop.f32.mrf.mxu1 }
 0x161   : > { %v578_v39 = vadd.f32 %v1142_v37, %v577_v38 }
 0x163   : > { %v581_v40 = vmax.f32 %v578_v39, 0.0 }
 0x165   : > { %v582_v41 = vpack.c.bf16 %v581_v40, %v581_v40 }
 0x167   : > { %659 = vmatmul.bf16.vlgmr.msra.gmra.mxu2 %v582_v41 }
 0x168   : > { %v579_v42 = vpop.f32.mrf.mxu1 }
 0x1ea   : > { %v660_v46 = vpop.f32.mrf.mxu2 }
 0x1eb   : > { %v661_v47 = vadd.f32 %v1143_v45, %v660_v46 }
 0x1ed   : > { %v664_v48 = vmax.f32 %v661_v47, 0.0 }
 0x1ef   : > { %v665_v49 = vpack.c.bf16 %v664_v48, %v664_v48 }
 0x1f1   : > { %742 = vmatmul.bf16.vlgmr.msra.gmra.mxu3 %v665_v49 }
 0x1f2   : > { %v662_v50 = vpop.f32.mrf.mxu2 }
 0x274   : > { %v743_v52 = vpop.f32.mrf.mxu3 }
 0x275   : > { %v744_v53 = vadd.f32 %v1144_v51, %v743_v52 }
 0x277   : > { %747 = vst [vmem:[%s415_s27] sm:$0xff] %v744_v53 }
 0x278   : > { %1322 = shalt.err (!%p1319_p9)
}
 0x279   : > { %1070 = dma.vmem_to_hbm [thread:$0]  (%p1514_p4), %s762_s20, 128, %s764_s1, %s749_s3  }
 0x27c   : > { %v745_v54 = vpop.f32.mrf.mxu3 }
 0x27d PF: > { %s775_s29 = sand.u32 1, %s1357_s30   ;;  %p1635_p10 = scmp.ge.s32.totalorder %s1369_s12, 2 }
 0x27e   : > { %s776_s21 = scalar_lea.sflag [#allocation4], %s775_s29 }
 0x27f   : > { %p1090_p13 = pnand %p1635_p10, %p1518_p6 }
 0x281   : > { %p1091_p11 = pneg %p1090_p13 }
 0x283   : > { %1352 = dma.done.wait (%p1091_p11), %s776_s21, 128  }
 0x284   : > { %1354 = vsyncadd (%p1091_p11), %s776_s21, 4294967168  ;;  %p24_p0 = scmp.ge.s32.totalorder %s1488_s25, 4   ;;  %s1636_s30 = smov %s1361_s10 }
 0x285   : > { %s1637_s10 = smov %s1365_s11  ;;  %s1638_s11 = smov %s1499_s26 }
 0x286   : > { %s1639_s12 = smov %s1488_s25  ;;  %26 = sbr.rel (!%p24_p0) target bundleno = 12 (0xc), region = 117 }
 0x28b   :  { %782 = vsyncpa [#allocation3], 1 }
 0x28c   :  { %784 = vsyncpa [#allocation3 + $0x1], 1 }
 0x28d   :  { %785 = vsyncpa [#allocation6], 1 }
 0x28e   :  { %786 = vsyncpa [#allocation9], 1 }
 0x28f   :  { %787 = vsyncpa [#allocation4], 1 }
 0x290   :  { %789 = vsyncpa [#allocation4 + $0x1], 1 }

// kernel: tpu_custom_call.1
= control target key start
LH: loop header
LB: loop body
LE: loop exit
PB: predicated region body
PF: predicated region fallthrough
CT: control target
= control target key end

     0   :  { %s1610_s0 = inlined_call_operand.hbm [shape: bf16[16,128], index: 0, kind: input, shape index: {}]   ;;  %s1611_s1 = inlined_call_operand.hbm [shape: bf16[128,128], index: 1, kind: input, shape index: {}]   ;;  %s1612_s2 = inlined_call_operand.vmem [shape: f32[1,128], index: 2, kind: input, shape index: {}]   ;;  %s1613_s3 = inlined_call_operand.hbm [shape: bf16[128,128], index: 3, kind: input, shape index: {}]   ;;  %s1614_s4 = inlined_call_operand.vmem [shape: f32[1,128], index: 4, kind: input, shape index: {}]   ;;  %s1615_s5 = inlined_call_operand.hbm [shape: bf16[128,128], index: 5, kind: input, shape index: {}]   ;;  %s1616_s6 = inlined_call_operand.vmem [shape: f32[1,128], index: 6, kind: input, shape index: {}]   ;;  %s1617_s7 = inlined_call_operand.hbm [shape: bf16[128,128], index: 7, kind: input, shape index: {}]   ;;  %s1618_s8 = inlined_call_operand.vmem [shape: f32[1,128], index: 8, kind: input, shape index: {}]   ;;  %s1619_s9 = inlined_call_operand.hbm [shape: f32[16,128], index: 9, kind: output, shape index: {}]  }
   0x1   :  { %1620 = sst [smem:[#allocation16_spill]] %s1611_s1 }
   0x2   :  { %1621 = sst [smem:[#allocation17_spill]] %s1613_s3 }
   0x3   :  { %1622 = sst [smem:[#allocation18_spill]] %s1615_s5 }
   0x4   :  { %1623 = sst [smem:[#allocation19_spill]] %s1617_s7 }
   0x5   :  { %14 = vsyncpa [#allocation3], 0 }
   0x6   :  { %16 = vsyncpa [#allocation3 + $0x1], 0 }
   0x7   :  { %17 = vsyncpa [#allocation6], 0 }
   0x8   :  { %18 = vsyncpa [#allocation9], 0 }
   0x9   :  { %19 = vsyncpa [#allocation4], 0 }
   0xa   :  { %21 = vsyncpa [#allocation4 + $0x1], 0  ;;  %s1427_s30 = smov 0   ;;  %s1429_s10 = smov 0  }
   0xb   :  { %s1431_s11 = smov 0   ;;  %s1433_s12 = smov 0  }
   0xc LB: > { %s1624_s1 = sld [smem:[#allocation16_spill]]  ;;  %s1451_s16 = sadd.s32 4294967295, %s1369_s12   ;;  %s1369_s12 = sphi %s1433_s12, %s1639_s12   ;;  %s1365_s11 = sphi %s1431_s11, %s1638_s11   ;;  %s1361_s10 = sphi %s1429_s10, %s1637_s10   ;;  %s1357_s30 = sphi %s1427_s30, %s1636_s30  }
   0xd   : > { %p873_p0 = scmp.ge.s32.totalorder %s1369_s12, 1  ;;  %p48_p1 = scmp.eq.s32.totalorder %s1451_s16, 0 }
   0xe   : > { %p252_p2 = scmp.lt.s32.totalorder %s1369_s12, 3  ;;  %s1371_s18 = smov [#allocation5]  }
   0xf   : > { %s265_s19 = sshll.u32 %s1371_s18, 4  ;;  %s1626_s5 = sld [smem:[#allocation18_spill]]  ;;  %s266_s19 = int_to_ptr.vmem [resolvable:$true] %s265_s19 }
  0x10   : > { %p1456_p3 = pnand %p873_p0, %p252_p2  ;;  %s1628_s3 = sld [smem:[#allocation17_spill]] }
  0x11   : > { %s1372_s27 = smov [#allocation8]   ;;  %s1373_s29 = smov 64  }
  0x12   : > { %s263_s15 = sshll.u32 %s1624_s1, 4  ;;  %p1072_p4 = pneg %p1456_p3  ;;  %s264_s15 = int_to_ptr.hbm [resolvable:$true] %s263_s15 }
  0x13   : > { %s299_s28 = sshll.u32 %s1372_s27, 4  ;;  %s1374_s13 = smov 4   ;;  %s300_s28 = int_to_ptr.vmem [resolvable:$true] %s299_s28 }
  0x14   : > { %p1468_p6 = pnand %p1072_p4, %p48_p1  ;;  %s1629_s7 = sld [smem:[#allocation19_spill]] }
  0x15   : > { %s297_s22 = sshll.u32 %s1626_s5, 4  ;;  %s1375_s21 = smov [#allocation7]   ;;  %s298_s22 = int_to_ptr.hbm [resolvable:$true] %s297_s22 }
  0x16   : > { %s280_s26 = sshll.u32 %s1628_s3, 4  ;;  %s282_s24 = sshll.u32 %s1375_s21, 4  ;;  %s281_s26 = int_to_ptr.hbm [resolvable:$true] %s280_s26  ;;  %s283_s24 = int_to_ptr.vmem [resolvable:$true] %s282_s24 }
  0x17   : > { %1075 = dma.hbm_to_vmem [thread:$0]  (!%p1468_p6), %s264_s15, 1024, %s266_s19, [#allocation6], %s1373_s29, %s1373_s29, %s1374_s13  }
  0x18   : > { %1081 = dma.hbm_to_vmem [thread:$0]  (!%p1468_p6), %s298_s22, 1024, %s300_s28, [#allocation9], %s1373_s29, %s1373_s29, %s1374_s13  }
  0x19   : > { %1078 = dma.hbm_to_vmem [thread:$0]  (!%p1468_p6), %s281_s26, 1024, %s283_s24, [#allocation6], %s1373_s29, %s1373_s29, %s1374_s13  }
  0x1a   : > { %s314_s20 = sshll.u32 %s1629_s7, 4  ;;  %s1376_s15 = smov [#allocation10]   ;;  %s315_s20 = int_to_ptr.hbm [resolvable:$true] %s314_s20 }
  0x1b   : > { %s316_s19 = sshll.u32 %s1376_s15, 4  ;;  %s872_s22 = sadd.s32 4294967294, %s1369_s12   ;;  %s317_s19 = int_to_ptr.vmem [resolvable:$true] %s316_s19 }
  0x1c   : > { %1084 = dma.hbm_to_vmem [thread:$0]  (!%p1468_p6), %s315_s20, 1024, %s317_s19, [#allocation9], %s1373_s29, %s1373_s29, %s1374_s13  }
  0x1d   : > { %s1488_s25 = sadd.s32 1, %s1369_s12   ;;  %s34_s28 = sadd.s32 1, %s1365_s11 }
  0x1e   : > { %s31_s27 = ssub.s32 %s1369_s12, %s1488_s25  ;;  %p41_p8 = scmp.ne.s32.totalorder %s1365_s11, %s1361_s10 }
  0x1f   : > { %p32_p7 = scmp.eq.s32.totalorder %s31_s27, 0  ;;  %p42_p9 = scmp.eq.s32.totalorder %s1369_s12, 0 }
  0x20   : > { %p47_p10 = scmp.ne.s32.totalorder %s1361_s10, %s1357_s30  ;;  %p239_p13 = scmp.eq.s32.totalorder %s1451_s16, 1 }
  0x21   : > { %s1499_s26 = scalar_select %p32_p7, %s1365_s11, %s34_s28  }
  0x22   : > { %p1501_p11 = por %p42_p9, %p41_p8  ;;  %p1507_p12 = por %p48_p1, %p47_p10 }
  0x23   : > { %p245_p0 = scmp.eq.s32.totalorder %s872_s22, 1  ;;  %p1097_p2 = scmp.lt.s32.totalorder %s1369_s12, 2 }
  0x24   : > { %s333_s29 = sand.u32 1, %s1365_s11   ;;  %p1514_p4 = por %p239_p13, %p41_p8 }
  0x25   : > { %p1518_p6 = por %p245_p0, %p47_p10  ;;  %s879_s20 = sshll.u32 %s333_s29, 2 }
  0x26   : > { %s880_s21 = sshll.u32 %s1369_s12, 2  ;;  %s337_s27 = scalar_lea.vmem [#allocation2], %s879_s20 }
  0x27   : > { %s341_s19 = scalar_lea.hbm %s1610_s0, %s880_s21  ;;  %s345_s28 = sshll.u32 %s337_s27, 4  ;;  %s346_s28 = int_to_ptr.vmem [resolvable:$true] %s345_s28 }
  0x28   : > { %s343_s1 = sshll.u32 %s341_s19, 4  ;;  %p1528_p7 = pnand %p1097_p2, %p1501_p11  ;;  %s344_s1 = int_to_ptr.hbm [resolvable:$true] %s343_s1 }
  0x29   : > { %s334_s3 = scalar_lea.sflag [#allocation3], %s333_s29  ;;  %s1265_s5 = sshra.s32 %s344_s1, 4  ;;  %s1266_s5 = int_to_ptr.hbm [resolvable:$true] %s1265_s5 }
  0x2a   : > { %s1267_s7 = scalar_lea.hbm %s1266_s5, 4  ;;  %p1269_p9 = pneg %p1528_p7 }
  0x2b   : > { %p1268_p8 = scmp.ne.s32.totalorder %s1266_s5, %s1267_s7  ;;  %s1272_s24 = scalar_lea.hbm %s1610_s0, 8 }
  0x2c   : > { %p1273_p11 = scmp.lt.s32.totalorder %s1266_s5, %s1610_s0  ;;  %p1274_p0 = scmp.lt.s32.totalorder %s1272_s24, %s1267_s7 }
  0x2d   : > { %p1270_p10 = pnand %p1269_p9, %p1268_p8 }
  0x2e   : > { %p1275_p2 = por %p1274_p0, %p1273_p11 }
  0x2f   : > { %p1271_p13 = pneg %p1270_p10 }
  0x31   : > { %p1276_p5 = pnand %p1275_p2, %p1271_p13 }
  0x33   : > { %1279 = shalt.err (!%p1276_p5)
}
  0x34   : > { %1088 = dma.hbm_to_vmem [thread:$0]  (!%p1528_p7), %s344_s1, 64, %s346_s28, %s334_s3  }
  0x35   : > { %354 = sbr.rel (%p1456_p3) target bundleno = 637 (0x27d), region = 56  ;;  %s1545_s29 = sand.u32 (!%p1456_p3), 1, %s1361_s10  }
  0x36   : > { %s882_s19 = sshll.u32 (!%p1456_p3), %s1545_s29, 2  ;;  %s357_s27 = scalar_lea.sflag (!%p1456_p3), [#allocation3], %s1545_s29 }
  0x37   : > { %s1549_s20 = scalar_lea.vmem (!%p1456_p3), [#allocation2], %s882_s19 }
  0x3a   : > { %1340 = dma.done.wait (%p1507_p12), %s357_s27, 64  }
  0x3b   : > { %1342 = vsyncadd (%p1507_p12), %s357_s27, 4294967232 }
  0x3c   : > { %1344 = dma.done.wait (%p48_p1), [#allocation6], 2048  }
  0x3d   : > { %1346 = vsyncadd (%p48_p1), [#allocation6], 4294965248 }
  0x3e   : > { %1348 = dma.done.wait (%p48_p1), [#allocation9], 2048  }
  0x3f   : > { %1350 = vsyncadd (%p48_p1), [#allocation9], 4294965248  ;;  %v1027_v0 = vld [vmem:[#allocation5 + $0x38] sm:$0xff]  ;;  %v1026_v1 = vld [vmem:[#allocation5 + $0x30] sm:$0xff]  ;;  %s1017_s28 = sshll.u32 %s1451_s16, 3  ;;  %s887_s22 = sshll.u32 %s1545_s29, 3 }
  0x40   : > { %485 = vmatpush.bf16.msra.mxu0 %v1027_v0  ;;  %v1035_v2 = vld [vmem:[#allocation7 + $0x38] sm:$0xff]  ;;  %v1034_v3 = vld [vmem:[#allocation7 + $0x30] sm:$0xff]  ;;  %v1025_v4 = vld [vmem:[#allocation5 + $0x28] sm:$0xff]  ;;  %s759_s15 = scalar_lea.hbm %s1619_s9, %s1017_s28  ;;  %s415_s27 = scalar_lea.vmem [#allocation11], %s887_s22 }
  0x41   : > { %568 = vmatpush.bf16.msra.mxu1 %v1035_v2  ;;  %v1033_v5 = vld [vmem:[#allocation7 + $0x28] sm:$0xff]  ;;  %v1024_v6 = vld [vmem:[#allocation5 + $0x20] sm:$0xff]  ;;  %v1023_v8 = vld [vmem:[#allocation5 + $0x18] sm:$0xff]  ;;  %s763_s1 = sshll.u32 %s759_s15, 4  ;;  %s749_s3 = scalar_lea.sflag [#allocation4], %s1545_s29  ;;  %s764_s1 = int_to_ptr.hbm [resolvable:$true] %s763_s1 }
  0x42   : > { %v1032_v7 = vld [vmem:[#allocation7 + $0x20] sm:$0xff]  ;;  %v1031_v9 = vld [vmem:[#allocation7 + $0x18] sm:$0xff]  ;;  %v1022_v10 = vld [vmem:[#allocation5 + $0x10] sm:$0xff]  ;;  %s1309_s16 = sshra.s32 %s764_s1, 4  ;;  %s1315_s23 = scalar_lea.hbm %s1619_s9, 16  ;;  %s1310_s16 = int_to_ptr.hbm [resolvable:$true] %s1309_s16 }
  0x43   : > { %v1030_v11 = vld [vmem:[#allocation7 + $0x10] sm:$0xff]  ;;  %v1021_v12 = vld [vmem:[#allocation5 + $0x8] sm:$0xff]  ;;  %v1020_v13 = vld [vmem:[#allocation5] sm:$0xff]  ;;  %s1311_s5 = scalar_lea.hbm %s1310_s16, 8  ;;  %p1316_p12 = scmp.lt.s32.totalorder %s1310_s16, %s1619_s9 }
  0x44   : > { %486 = vmatpush.bf16.msra.mxu0 %v1026_v1  ;;  %v416_v14 = vld [vmem:[%s1549_s20] sm:$0xf]  ;;  %v1029_v15 = vld [vmem:[#allocation7 + $0x8] sm:$0xff]  ;;  %v1028_v16 = vld [vmem:[#allocation7] sm:$0xff]  ;;  %s761_s20 = sshll.u32 %s415_s27, 4  ;;  %p1312_p1 = scmp.ne.s32.totalorder %s1310_s16, %s1311_s5  ;;  %s762_s20 = int_to_ptr.vmem [resolvable:$true] %s761_s20 }
  0x45   : > { %569 = vmatpush.bf16.msra.mxu1 %v1034_v3  ;;  %v1043_v17 = vld [vmem:[#allocation8 + $0x38] sm:$0xff]  ;;  %v1042_v18 = vld [vmem:[#allocation8 + $0x30] sm:$0xff]  ;;  %v1041_v19 = vld [vmem:[#allocation8 + $0x28] sm:$0xff]  ;;  %p1317_p7 = scmp.lt.s32.totalorder %s1315_s23, %s1311_s5 }
  0x46   : > { %651 = vmatpush.bf16.msra.mxu2 %v1043_v17  ;;  %v1040_v20 = vld [vmem:[#allocation8 + $0x20] sm:$0xff]  ;;  %v1039_v21 = vld [vmem:[#allocation8 + $0x18] sm:$0xff]  ;;  %v1038_v22 = vld [vmem:[#allocation8 + $0x10] sm:$0xff]  ;;  %p1313_p3 = pnand %p1312_p1, %p1514_p4 }
  0x47   : > { %v1141_v23 = vld [vmem:[%s1612_s2] ss:$0 sm:$0xff]  ;;  %v1037_v29 = vld [vmem:[#allocation8 + $0x8] sm:$0xff]  ;;  %v1036_v30 = vld [vmem:[#allocation8] sm:$0xff]  ;;  %p1318_p8 = por %p1317_p7, %p1316_p12 }
  0x48   : > { %487 = vmatpush.bf16.msra.mxu0 %v1025_v4  ;;  %v1051_v31 = vld [vmem:[#allocation10 + $0x38] sm:$0xff]  ;;  %v1050_v32 = vld [vmem:[#allocation10 + $0x30] sm:$0xff]  ;;  %v1049_v33 = vld [vmem:[#allocation10 + $0x28] sm:$0xff]  ;;  %p1314_p5 = pneg %p1313_p3 }
  0x49   : > { %570 = vmatpush.bf16.msra.mxu1 %v1033_v5  ;;  %734 = vmatpush.bf16.msra.mxu3 %v1051_v31  ;;  %v1048_v34 = vld [vmem:[#allocation10 + $0x20] sm:$0xff]  ;;  %v1047_v35 = vld [vmem:[#allocation10 + $0x18] sm:$0xff]  ;;  %v1046_v36 = vld [vmem:[#allocation10 + $0x10] sm:$0xff] }
  0x4a   : > { %652 = vmatpush.bf16.msra.mxu2 %v1042_v18  ;;  %v1142_v37 = vld [vmem:[%s1614_s4] ss:$0 sm:$0xff]  ;;  %v1045_v43 = vld [vmem:[#allocation10 + $0x8] sm:$0xff]  ;;  %v1044_v44 = vld [vmem:[#allocation10] sm:$0xff]  ;;  %p1319_p9 = pnand %p1318_p8, %p1314_p5 }
  0x4b   : > { %v1143_v45 = vld [vmem:[%s1616_s6] ss:$0 sm:$0xff] }
  0x4c   : > { %488 = vmatpush.bf16.msra.mxu0 %v1024_v6  ;;  %v1144_v51 = vld [vmem:[%s1618_s8] ss:$0 sm:$0xff] }
  0x4d   : > { %571 = vmatpush.bf16.msra.mxu1 %v1032_v7  ;;  %735 = vmatpush.bf16.msra.mxu3 %v1050_v32 }
  0x4e   : > { %653 = vmatpush.bf16.msra.mxu2 %v1041_v19 }
  0x50   : > { %489 = vmatpush.bf16.msra.mxu0 %v1023_v8 }
  0x51   : > { %572 = vmatpush.bf16.msra.mxu1 %v1031_v9  ;;  %736 = vmatpush.bf16.msra.mxu3 %v1049_v33 }
  0x52   : > { %654 = vmatpush.bf16.msra.mxu2 %v1040_v20 }
  0x54   : > { %490 = vmatpush.bf16.msra.mxu0 %v1022_v10 }
  0x55   : > { %573 = vmatpush.bf16.msra.mxu1 %v1030_v11  ;;  %737 = vmatpush.bf16.msra.mxu3 %v1048_v34 }
  0x56   : > { %655 = vmatpush.bf16.msra.mxu2 %v1039_v21 }
  0x58   : > { %491 = vmatpush.bf16.msra.mxu0 %v1021_v12 }
  0x59   : > { %574 = vmatpush.bf16.msra.mxu1 %v1029_v15  ;;  %738 = vmatpush.bf16.msra.mxu3 %v1047_v35 }
  0x5a   : > { %656 = vmatpush.bf16.msra.mxu2 %v1038_v22 }
  0x5c   : > { %492 = vmatpush.bf16.msra.mxu0 %v1020_v13 }
  0x5d   : > { %575 = vmatpush.bf16.msra.mxu1 %v1028_v16  ;;  %739 = vmatpush.bf16.msra.mxu3 %v1046_v36 }
  0x5e   : > { %657 = vmatpush.bf16.msra.mxu2 %v1037_v29 }
  0x5f   : > { %493 = vmatmul.bf16.vlgmr.msra.gmra.mxu0 %v416_v14 }
  0x61   : > { %740 = vmatpush.bf16.msra.mxu3 %v1045_v43 }
  0x62   : > { %658 = vmatpush.bf16.msra.mxu2 %v1036_v30 }
  0x65   : > { %741 = vmatpush.bf16.msra.mxu3 %v1044_v44 }
  0xdc   : > { %v494_v24 = vpop.f32.mrf.mxu0 }
  0xdd   : > { %v495_v25 = vadd.f32 %v1141_v23, %v494_v24 }
  0xdf   : > { %v498_v26 = vmax.f32 %v495_v25, 0.0 }
  0xe1   : > { %v499_v27 = vpack.c.bf16 %v498_v26, %v498_v26 }
  0xe3   : > { %576 = vmatmul.bf16.vlgmr.msra.gmra.mxu1 %v499_v27 }
  0xe4   : > { %v496_v28 = vpop.f32.mrf.mxu0 }
 0x160   : > { %v577_v38 = vpop.f32.mrf.mxu1 }
 0x161   : > { %v578_v39 = vadd.f32 %v1142_v37, %v577_v38 }
 0x163   : > { %v581_v40 = vmax.f32 %v578_v39, 0.0 }
 0x165   : > { %v582_v41 = vpack.c.bf16 %v581_v40, %v581_v40 }
 0x167   : > { %659 = vmatmul.bf16.vlgmr.msra.gmra.mxu2 %v582_v41 }
 0x168   : > { %v579_v42 = vpop.f32.mrf.mxu1 }
 0x1ea   : > { %v660_v46 = vpop.f32.mrf.mxu2 }
 0x1eb   : > { %v661_v47 = vadd.f32 %v1143_v45, %v660_v46 }
 0x1ed   : > { %v664_v48 = vmax.f32 %v661_v47, 0.0 }
 0x1ef   : > { %v665_v49 = vpack.c.bf16 %v664_v48, %v664_v48 }
 0x1f1   : > { %742 = vmatmul.bf16.vlgmr.msra.gmra.mxu3 %v665_v49 }
 0x1f2   : > { %v662_v50 = vpop.f32.mrf.mxu2 }
 0x274   : > { %v743_v52 = vpop.f32.mrf.mxu3 }
 0x275   : > { %v744_v53 = vadd.f32 %v1144_v51, %v743_v52 }
 0x277   : > { %747 = vst [vmem:[%s415_s27] sm:$0xff] %v744_v53 }
 0x278   : > { %1322 = shalt.err (!%p1319_p9)
}
 0x279   : > { %1070 = dma.vmem_to_hbm [thread:$0]  (%p1514_p4), %s762_s20, 128, %s764_s1, %s749_s3  }
 0x27c   : > { %v745_v54 = vpop.f32.mrf.mxu3 }
 0x27d PF: > { %s775_s29 = sand.u32 1, %s1357_s30   ;;  %p1635_p10 = scmp.ge.s32.totalorder %s1369_s12, 2 }
 0x27e   : > { %s776_s21 = scalar_lea.sflag [#allocation4], %s775_s29 }
 0x27f   : > { %p1090_p13 = pnand %p1635_p10, %p1518_p6 }
 0x281   : > { %p1091_p11 = pneg %p1090_p13 }
 0x283   : > { %1352 = dma.done.wait (%p1091_p11), %s776_s21, 128  }
 0x284   : > { %1354 = vsyncadd (%p1091_p11), %s776_s21, 4294967168  ;;  %p24_p0 = scmp.ge.s32.totalorder %s1488_s25, 4   ;;  %s1636_s30 = smov %s1361_s10 }
 0x285   : > { %s1637_s10 = smov %s1365_s11  ;;  %s1638_s11 = smov %s1499_s26 }
 0x286   : > { %s1639_s12 = smov %s1488_s25  ;;  %26 = sbr.rel (!%p24_p0) target bundleno = 12 (0xc), region = 117 }
 0x28b   :  { %782 = vsyncpa [#allocation3], 1 }
 0x28c   :  { %784 = vsyncpa [#allocation3 + $0x1], 1 }
 0x28d   :  { %785 = vsyncpa [#allocation6], 1 }
 0x28e   :  { %786 = vsyncpa [#allocation9], 1 }
 0x28f   :  { %787 = vsyncpa [#allocation4], 1 }
 0x290   :  { %789 = vsyncpa [#allocation4 + $0x1], 1 }

</bundles_post_ra>
